<compile_context>
chip_gen: v7x
topology: tpu7x:2x2x1
jax: 0.10.0
libtpu: 0.0.40
codegen_flags: <defaults>
</compile_context>

<pallas_src>
import math
from functools import partial

import jax
import jax.numpy as jnp
import numpy as np
from jax.experimental import pallas as pl
from jax.experimental.pallas import tpu as pltpu

ROPE_BASE = 10000.0
RMS_EPS = 1e-6
NEG_INF = -1e9


# ------------------------------ RoPE (full row) ------------------------------ #
def _rope_full_row(x, cos_p, sin_neg, sin_pos, d_k):
    """RoPE applied to a whole (rows, D) slab in head-contiguous column order.

    Host-side tables are built so that
        out[g] = x[g]*cos_p[g] + x[(g+half)%D]*sin_neg[g] + x[(g-half)%D]*sin_pos[g]
    reproduces the reference rotate_half RoPE on the original interleaved layout
    (sin_neg is nonzero only on first-half-of-head columns, sin_pos on the rest).
    No per-head loops: one/two lane rotations over the full row.
    """
    D = x.shape[-1]
    half = d_k // 2
    if D % 128 == 0:
        # Production path: lane rotations on the XLU (pltpu.roll == jnp.roll semantics).
        fwd = pltpu.roll(x, D - half, axis=-1)     # fwd[g] = x[(g + half) % D]
        bwd = pltpu.roll(x, half, axis=-1)         # bwd[g] = x[(g - half) % D]
    else:
        # Small / 128-unaligned D (demo shapes): identical rotation via slice+concat.
        fwd = jnp.concatenate([x[:, half:], x[:, :half]], axis=-1)
        bwd = jnp.concatenate([x[:, D - half:], x[:, :D - half]], axis=-1)
    return x * cos_p + fwd * sin_neg + bwd * sin_pos


# ---------------- kernel 1: fused QKV + RoPE + head re-layout ---------------- #
def _qkv_rope_kernel(emb_ref, cos_ref, sneg_ref, spos_ref, wqkv_ref, bqkv_ref,
                     q_ref, k_ref, v_ref, *, n_heads, d_k):
    D = n_heads * d_k
    x = emb_ref[0].astype(wqkv_ref.dtype)                              # (ts, D)
    qkv = jnp.dot(x, wqkv_ref[...], preferred_element_type=jnp.float32) + bqkv_ref[...]

    cos_p, sneg, spos = cos_ref[...], sneg_ref[...], spos_ref[...]
    q = _rope_full_row(qkv[:, :D], cos_p, sneg, spos, d_k)             # (ts, D) f32
    k = _rope_full_row(qkv[:, D:2 * D], cos_p, sneg, spos, d_k)
    v = qkv[:, 2 * D:]

    # Once-per-token head re-layout (amortised over every query tile that later
    # consumes it).  TODO(synk): replace with a single pltpu.einshape relayout
    # once exercised at production d_k (d_k % 128 == 0).
    for h in range(n_heads):
        sl = slice(h * d_k, (h + 1) * d_k)
        q_ref[0, h] = q[:, sl].astype(q_ref.dtype)
        k_ref[0, h] = k[:, sl].astype(k_ref.dtype)
        v_ref[0, h] = v[:, sl].astype(v_ref.dtype)


# ------------- kernel 2: query-tiled attention + RMSNorm + SwiGLU ------------ #
def _attn_ffn_kernel(emb_ref, q_ref, k_ref, v_ref, bias_ref,
                     wo_ref, bo_ref, w1_ref, b1_ref, w2_ref, b2_ref, alpha_ref,
                     out_ref, *, n_heads, d_k, ff_half):
    D = n_heads * d_k
    cd = wo_ref.dtype

    x = emb_ref[0]                              # (tq, D) f32 residual path
    q3 = q_ref[0]                               # (H, tq, d_k), RoPE'd, scale folded in
    k3 = k_ref[0]                               # (H, S,  d_k)
    v3 = v_ref[0]                               # (H, S,  d_k)

    # Head-batched attention for this query tile over all keys.
    sc = jnp.einsum("hqd,hkd->hqk", q3, k3, preferred_element_type=jnp.float32)
    sc = sc + bias_ref[...]                     # additive key mask (H, 1, S)
    sc = sc - jnp.max(sc, axis=-1, keepdims=True)
    e = jnp.exp(sc)
    p = e * pl.reciprocal(jnp.sum(e, axis=-1, keepdims=True), approx=True)
    ctx = jnp.einsum("hqk,hkd->hqd", p.astype(cd), v3,
                     preferred_element_type=jnp.float32)               # (H, tq, d_k)

    # Merge heads (head-contiguous columns) and one full-D output projection.
    merged = jnp.concatenate([ctx[h] for h in range(n_heads)], axis=-1)    # (tq, D)
    attn = jnp.dot(merged.astype(cd), wo_ref[...],
                   preferred_element_type=jnp.float32) + bo_ref[...]

    alpha = alpha_ref[...]

    def rms_norm(t):                            # f32 stats; exact reciprocal (output path)
        rms = jnp.sqrt(jnp.sum(t * t, axis=-1, keepdims=True)) * (D ** -0.5)
        return alpha * (t * pl.reciprocal(rms + RMS_EPS, approx=False))

    x1 = rms_norm(attn + x)

    # FeedForward: Linear -> SwiGLU -> (dropout: identity) -> Linear
    h1 = jnp.dot(x1.astype(cd), w1_ref[...],
                 preferred_element_type=jnp.float32) + b1_ref[...]     # (tq, 2*ff_half)
    ff = jax.nn.silu(h1[:, ff_half:]) * h1[:, :ff_half]                # f32
    y = jnp.dot(ff.astype(cd), w2_ref[...],
                preferred_element_type=jnp.float32) + b2_ref[...]      # (tq, D)

    out_ref[0] = rms_norm(y + x1).astype(out_ref.dtype)


# ------------------------------ wrapper helpers ------------------------------ #
def _pick_tile(n, target):
    """Largest tile <= target that divides n and is a multiple of 8 (or n itself)."""
    if n <= target:
        return n
    for t in range(target, 0, -1):
        if n % t == 0 and t % 8 == 0:
            return t
    return n


def _vmem_limit_bytes():
    phys = 128 * 1024 * 1024
    try:
        info = pltpu.get_tpu_info()
        phys = int(getattr(info, "vmem_capacity_bytes", phys) or phys)
    except Exception:
        pass
    # Leave headroom under the physical capacity: v7x 64 MiB -> 48 MiB,
    # v5e/v6e 128 MiB -> 96 MiB.
    return min(phys * 3 // 4, 96 * 1024 * 1024)


def _const_spec(shape):
    """Constant-index block: fetched once, single-buffered (no dead 2nd buffer)."""
    n = len(shape)
    return pl.BlockSpec(shape, lambda b, i: (0,) * n, pipeline_mode=pl.Buffered(1))


# ------------------------------ wrapper (glue) ------------------------------- #
def encoder_layer_pallas(emb, mask, params, n_heads,
                         compute_dtype=jnp.bfloat16, out_dtype=jnp.bfloat16):
    B, S, D = emb.shape
    assert D % n_heads == 0
    d_k = D // n_heads
    assert d_k % 2 == 0, "RoPE requires an even per-head dim"
    ff_half = params["w1"].shape[1] // 2
    H = n_heads

    # ---- host-side constant prep (once per layer; not per-token work) ----
    # RoPE tables in the original interleaved column order f = d*n_heads + h,
    # permuted to head-contiguous order g = h*d_k + d; rotate_half sign and
    # half-selection folded into two zero-masked sin tables.
    theta = 1.0 / (ROPE_BASE ** (np.arange(0, D, 2, dtype=np.float64) / D))
    freqs = np.arange(S, dtype=np.float64)[:, None] * theta[None, :]
    pos = np.concatenate([freqs, freqs], axis=-1)                       # (S, D)
    g = np.arange(D)
    f_of_g = (g % d_k) * n_heads + (g // d_k)                           # g -> original column
    cos_p = jnp.asarray(np.cos(pos)[:, f_of_g], jnp.float32)            # (S, D)
    sin_p = np.sin(pos)[:, f_of_g]
    first = (g % d_k) < (d_k // 2)
    sin_neg = jnp.asarray(np.where(first[None, :], -sin_p, 0.0), jnp.float32)
    sin_pos = jnp.asarray(np.where(first[None, :], 0.0, sin_p), jnp.float32)

    # Fold head permutation into the QKV weight columns; fold 1/sqrt(d_k) into wq/bq.
    perm = jnp.asarray(f_of_g)
    scale = 1.0 / math.sqrt(d_k)
    wqkv = jnp.concatenate(
        [params["wq"][:, perm] * scale, params["wk"][:, perm], params["wv"][:, perm]],
        axis=1).astype(compute_dtype)                                    # (D, 3D)
    bqkv = jnp.concatenate(
        [params["bq"][perm] * scale, params["bk"][perm], params["bv"][perm]],
        axis=0).reshape(1, 3 * D).astype(jnp.float32)

    # Additive key mask.  torch's masked_fill right-aligns the (B, 1, S) mask onto
    # (B, H, S, S), so its batch dim lands on the HEAD dim (needs B == H or B == 1);
    # reproduced exactly, with only (H, 1, S) floats ever leaving HBM.
    mask_h = jnp.broadcast_to(mask.astype(jnp.float32), (H, 1, S))
    bias = jnp.where(mask_h == 0, NEG_INF, 0.0).astype(jnp.float32)      # (H, 1, S)

    ts = _pick_tile(S, 256)     # token tile (kernel 1)
    tq = _pick_tile(S, 256)     # query tile (kernel 2); >=256 fills v6e/v7x MXU lanes
    vmem_limit = _vmem_limit_bytes()
    row = lambda a: a.reshape(1, -1).astype(jnp.float32)

    # ---- kernel 1: fused QKV projection + RoPE + per-head re-layout ----
    hs_shape = jax.ShapeDtypeStruct((B, H, S, d_k), compute_dtype)
    qkv_fn = pl.pallas_call(
        partial(_qkv_rope_kernel, n_heads=H, d_k=d_k),
        out_shape=(hs_shape, hs_shape, hs_shape),
        grid_spec=pltpu.PrefetchScalarGridSpec(
            num_scalar_prefetch=0,
            grid=(B, S // ts),
            in_specs=[
                pl.BlockSpec((1, ts, D), lambda b, s: (b, s, 0)),
                pl.BlockSpec((ts, D), lambda b, s: (s, 0)),
                pl.BlockSpec((ts, D), lambda b, s: (s, 0)),
                pl.BlockSpec((ts, D), lambda b, s: (s, 0)),
                _const_spec((D, 3 * D)),
                _const_spec((1, 3 * D)),
            ],
            out_specs=[pl.BlockSpec((1, H, ts, d_k), lambda b, s: (b, 0, s, 0))] * 3,
        ),
        compiler_params=pltpu.CompilerParams(
            dimension_semantics=("parallel", "parallel"),
            vmem_limit_bytes=vmem_limit,
        ),
    )
    q3, k3, v3 = qkv_fn(emb.astype(jnp.float32), cos_p, sin_neg, sin_pos, wqkv, bqkv)

    # ---- kernel 2: per-query-tile attention + residual/RMSNorm + SwiGLU FFN ----
    attn_fn = pl.pallas_call(
        partial(_attn_ffn_kernel, n_heads=H, d_k=d_k, ff_half=ff_half),
        out_shape=jax.ShapeDtypeStruct((B, S, D), out_dtype),
        grid_spec=pltpu.PrefetchScalarGridSpec(
            num_scalar_prefetch=0,
            grid=(B, S // tq),
            in_specs=[
                pl.BlockSpec((1, tq, D), lambda b, q: (b, q, 0)),           # residual x
                pl.BlockSpec((1, H, tq, d_k), lambda b, q: (b, 0, q, 0)),   # Q tile
                pl.BlockSpec((1, H, S, d_k), lambda b, q: (b, 0, 0, 0)),    # K (per batch)
                pl.BlockSpec((1, H, S, d_k), lambda b, q: (b, 0, 0, 0)),    # V (per batch)
                _const_spec((H, 1, S)),                                     # mask bias
                _const_spec((D, D)),                                        # wo
                _const_spec((1, D)),                                        # bo
                _const_spec((D, 2 * ff_half)),                              # w1
                _const_spec((1, 2 * ff_half)),                              # b1
                _const_spec((ff_half, D)),                                  # w2
                _const_spec((1, D)),                                        # b2
                _const_spec((1, D)),                                        # alpha
            ],
            out_specs=pl.BlockSpec((1, tq, D), lambda b, q: (b, q, 0)),
        ),
        compiler_params=pltpu.CompilerParams(
            dimension_semantics=("parallel", "parallel"),
            vmem_limit_bytes=vmem_limit,
        ),
    )
    return attn_fn(
        emb.astype(jnp.float32), q3, k3, v3, bias,
        params["wo"].astype(compute_dtype), row(params["bo"]),
        params["w1"].astype(compute_dtype), row(params["b1"]),
        params["w2"].astype(compute_dtype), row(params["b2"]),
        row(params["alpha"]),
    )


# ------------------------- pure-JAX reference (check) ------------------------ #
def encoder_layer_ref(emb, mask, params, n_heads):
    B, S, D = emb.shape
    d_k = D // n_heads
    ff_half = params["w1"].shape[1] // 2

    def linear(x, w, b):
        return x @ w + b

    def rope(x):
        theta = 1.0 / (ROPE_BASE ** (jnp.arange(0, D, 2, dtype=jnp.float32) / D))
        freqs = jnp.einsum("i,j->ij", jnp.arange(S, dtype=jnp.float32), theta)
        pos = jnp.concatenate([freqs, freqs], axis=-1)
        x1, x2 = x[..., : D // 2], x[..., D // 2:]
        rh = jnp.concatenate([-x2, x1], axis=-1)
        return x * jnp.cos(pos) + rh * jnp.sin(pos)

    q = rope(linear(emb, params["wq"], params["bq"]))
    k = rope(linear(emb, params["wk"], params["bk"]))
    v = linear(emb, params["wv"], params["bv"])

    def split_heads(t):  # 'b c (h w) -> b w c h', h=d_k
        return t.reshape(B, S, d_k, n_heads).transpose(0, 3, 1, 2)

    q, k, v = split_heads(q), split_heads(k), split_heads(v)
    scores = jnp.einsum("bhqd,bhkd->bhqk", q, k) / math.sqrt(d_k)
    scores = jnp.where(jnp.broadcast_to(mask == 0, scores.shape), NEG_INF, scores)
    weights = jax.nn.softmax(scores, axis=-1)
    ctx = jnp.einsum("bhqk,bhkd->bhqd", weights, v)
    merged = ctx.transpose(0, 2, 1, 3).reshape(B, S, D)   # 'b c h w -> b h (c w)'
    attn = linear(merged, params["wo"], params["bo"])

    def rms_norm(t):
        norm = jnp.linalg.norm(t, axis=-1, keepdims=True)
        return params["alpha"] * (t / (norm * (D ** -0.5) + RMS_EPS))

    x1 = rms_norm(attn + emb)
    h = linear(x1, params["w1"], params["b1"])
    lhs, gate = h[..., :ff_half], h[..., ff_half:]
    ff = linear(jax.nn.silu(gate) * lhs, params["w2"], params["b2"])
    return rms_norm(ff + x1)


# --------------------------------- params ------------------------------------ #
def init_params(key, embed_dim, ff_dim=2048):
    ks = jax.random.split(key, 6)

    def lin(k, fan_in, fan_out):
        kw, kb = jax.random.split(k)
        w = jax.random.normal(kw, (fan_in, fan_out), jnp.float32) / np.sqrt(fan_in)
        b = 0.02 * jax.random.normal(kb, (fan_out,), jnp.float32)
        return w, b

    wq, bq = lin(ks[0], embed_dim, embed_dim)
    wk, bk = lin(ks[1], embed_dim, embed_dim)
    wv, bv = lin(ks[2], embed_dim, embed_dim)
    wo, bo = lin(ks[3], embed_dim, embed_dim)
    w1, b1 = lin(ks[4], embed_dim, ff_dim)
    w2, b2 = lin(ks[5], ff_dim // 2, embed_dim)
    alpha = jnp.ones((embed_dim,), jnp.float32)   # matches torch.ones init of RMSNorm
    return dict(wq=wq, bq=bq, wk=wk, bk=bk, wv=wv, bv=bv, wo=wo, bo=bo,
                w1=w1, b1=b1, w2=w2, b2=b2, alpha=alpha)


if __name__ == "__main__":
    B, S, D, N_HEADS = 2, 8, 32, 2   # B must equal n_heads (or 1): torch's mask-broadcast quirk
    key = jax.random.PRNGKey(0)
    k_emb, k_par = jax.random.split(key)

    embeddings = jax.random.normal(k_emb, (B, S, D), jnp.float32)
    valid_lens = jnp.array([S, S - 2])
    mask = (jnp.arange(S)[None, None, :] < valid_lens[:, None, None]).astype(jnp.float32)  # (B,1,S)

    params = init_params(k_par, D)
    ref = encoder_layer_ref(embeddings, mask, params, N_HEADS)

    # f32 pass — structural correctness (approx reciprocal only in the softmax denom).
    out_f32 = jax.block_until_ready(
        encoder_layer_pallas(embeddings, mask, params, N_HEADS,
                             compute_dtype=jnp.float32, out_dtype=jnp.float32))
    assert out_f32.shape == (B, S, D), out_f32.shape
    if not jnp.allclose(out_f32, ref, atol=2e-2, rtol=2e-2):
        raise AssertionError(
            f"f32 mismatch vs reference, max abs err = {float(jnp.max(jnp.abs(out_f32 - ref)))}")

    # bf16 pass — performance configuration (bf16 MXU operands + bf16 output, f32 accumulation).
    out_bf16 = jax.block_until_ready(
        encoder_layer_pallas(embeddings, mask, params, N_HEADS,
                             compute_dtype=jnp.bfloat16, out_dtype=jnp.bfloat16))
    err16 = float(jnp.max(jnp.abs(out_bf16.astype(jnp.float32) - ref)))
    if not jnp.allclose(out_bf16.astype(jnp.float32), ref, atol=1e-1, rtol=1e-1):
        raise AssertionError(f"bf16 mismatch vs reference, max abs err = {err16}")

    print("KERNEL_OK")
</pallas_src>

<mosaic_0001>
module attributes {stable_mosaic.version = 11 : i64} {
  func.func @_qkv_rope_kernel(%arg0: i32, %arg1: i32, %arg2: memref<1x8x32xf32, #tpu.memory_space<vmem>>, %arg3: memref<8x32xf32, #tpu.memory_space<vmem>>, %arg4: memref<8x32xf32, #tpu.memory_space<vmem>>, %arg5: memref<8x32xf32, #tpu.memory_space<vmem>>, %arg6: memref<32x96xf32, #tpu.memory_space<vmem>>, %arg7: memref<1x96xf32, #tpu.memory_space<vmem>>, %arg8: memref<1x2x8x16xf32, #tpu.memory_space<vmem>>, %arg9: memref<1x2x8x16xf32, #tpu.memory_space<vmem>>, %arg10: memref<1x2x8x16xf32, #tpu.memory_space<vmem>>) attributes {dimension_semantics = [#tpu.dimension_semantics<parallel>, #tpu.dimension_semantics<parallel>], iteration_bounds = array<i64: 2, 1>, scalar_prefetch = 0 : i64, scratch_operands = 0 : i64, tpu.core_type = #tpu.core_type<tc>, window_params = [{transform_indices = @transform_0, window_bounds = array<i64: 1, 8, 32>}, {transform_indices = @transform_1, window_bounds = array<i64: 8, 32>}, {transform_indices = @transform_2, window_bounds = array<i64: 8, 32>}, {transform_indices = @transform_3, window_bounds = array<i64: 8, 32>}, {pipeline_mode = #tpu.pipeline_mode<synchronous>, transform_indices = @transform_4, window_bounds = array<i64: 32, 96>}, {pipeline_mode = #tpu.pipeline_mode<synchronous>, transform_indices = @transform_5, window_bounds = array<i64: 1, 96>}, {transform_indices = @transform_6, window_bounds = array<i64: 1, 2, 8, 16>}, {transform_indices = @transform_7, window_bounds = array<i64: 1, 2, 8, 16>}, {transform_indices = @transform_8, window_bounds = array<i64: 1, 2, 8, 16>}]} {
    %c0 = arith.constant 0 : index
    %c0_0 = arith.constant 0 : index
    %c0_1 = arith.constant 0 : index
    %0 = vector.load %arg2[%c0, %c0_0, %c0_1] : memref<1x8x32xf32, #tpu.memory_space<vmem>>, vector<1x8x32xf32>
    %1 = vector.shape_cast %0 : vector<1x8x32xf32> to vector<8x32xf32>
    %c0_2 = arith.constant 0 : index
    %c0_3 = arith.constant 0 : index
    %2 = vector.load %arg6[%c0_2, %c0_3] : memref<32x96xf32, #tpu.memory_space<vmem>>, vector<32x96xf32>
    %cst = arith.constant dense<0.000000e+00> : vector<8x96xf32>
    %3 = tpu.matmul %1, %2, %cst {dimension_numbers = #tpu.dot_dimension_numbers<[1], [0], [0], [1], [0, 0, 1, 1], [], []>} : vector<8x32xf32>, vector<32x96xf32>, vector<8x96xf32> -> vector<8x96xf32>
    %c0_4 = arith.constant 0 : index
    %c0_5 = arith.constant 0 : index
    %4 = vector.load %arg7[%c0_4, %c0_5] : memref<1x96xf32, #tpu.memory_space<vmem>>, vector<1x96xf32>
    %5 = vector.broadcast %4 : vector<1x96xf32> to vector<8x96xf32>
    %6 = arith.addf %3, %5 : vector<8x96xf32>
    %c0_6 = arith.constant 0 : index
    %c0_7 = arith.constant 0 : index
    %7 = vector.load %arg3[%c0_6, %c0_7] : memref<8x32xf32, #tpu.memory_space<vmem>>, vector<8x32xf32>
    %c0_8 = arith.constant 0 : index
    %c0_9 = arith.constant 0 : index
    %8 = vector.load %arg4[%c0_8, %c0_9] : memref<8x32xf32, #tpu.memory_space<vmem>>, vector<8x32xf32>
    %c0_10 = arith.constant 0 : index
    %c0_11 = arith.constant 0 : index
    %9 = vector.load %arg5[%c0_10, %c0_11] : memref<8x32xf32, #tpu.memory_space<vmem>>, vector<8x32xf32>
    %10 = vector.extract_strided_slice %6 {offsets = [0, 0], sizes = [8, 32], strides = [1, 1]} : vector<8x96xf32> to vector<8x32xf32>
    %11 = vector.extract_strided_slice %10 {offsets = [0, 8], sizes = [8, 24], strides = [1, 1]} : vector<8x32xf32> to vector<8x24xf32>
    %12 = vector.extract_strided_slice %10 {offsets = [0, 0], sizes = [8, 8], strides = [1, 1]} : vector<8x32xf32> to vector<8x8xf32>
    %13 = tpu.concatenate %11, %12 in 1 : vector<8x24xf32>, vector<8x8xf32> -> vector<8x32xf32>
    %14 = vector.extract_strided_slice %10 {offsets = [0, 24], sizes = [8, 8], strides = [1, 1]} : vector<8x32xf32> to vector<8x8xf32>
    %15 = vector.extract_strided_slice %10 {offsets = [0, 0], sizes = [8, 24], strides = [1, 1]} : vector<8x32xf32> to vector<8x24xf32>
    %16 = tpu.concatenate %14, %15 in 1 : vector<8x8xf32>, vector<8x24xf32> -> vector<8x32xf32>
    %17 = arith.mulf %10, %7 : vector<8x32xf32>
    %18 = arith.mulf %13, %8 : vector<8x32xf32>
    %19 = arith.addf %17, %18 : vector<8x32xf32>
    %20 = arith.mulf %16, %9 : vector<8x32xf32>
    %21 = arith.addf %19, %20 : vector<8x32xf32>
    %22 = vector.extract_strided_slice %6 {offsets = [0, 32], sizes = [8, 32], strides = [1, 1]} : vector<8x96xf32> to vector<8x32xf32>
    %23 = vector.extract_strided_slice %22 {offsets = [0, 8], sizes = [8, 24], strides = [1, 1]} : vector<8x32xf32> to vector<8x24xf32>
    %24 = vector.extract_strided_slice %22 {offsets = [0, 0], sizes = [8, 8], strides = [1, 1]} : vector<8x32xf32> to vector<8x8xf32>
    %25 = tpu.concatenate %23, %24 in 1 : vector<8x24xf32>, vector<8x8xf32> -> vector<8x32xf32>
    %26 = vector.extract_strided_slice %22 {offsets = [0, 24], sizes = [8, 8], strides = [1, 1]} : vector<8x32xf32> to vector<8x8xf32>
    %27 = vector.extract_strided_slice %22 {offsets = [0, 0], sizes = [8, 24], strides = [1, 1]} : vector<8x32xf32> to vector<8x24xf32>
    %28 = tpu.concatenate %26, %27 in 1 : vector<8x8xf32>, vector<8x24xf32> -> vector<8x32xf32>
    %29 = arith.mulf %22, %7 : vector<8x32xf32>
    %30 = arith.mulf %25, %8 : vector<8x32xf32>
    %31 = arith.addf %29, %30 : vector<8x32xf32>
    %32 = arith.mulf %28, %9 : vector<8x32xf32>
    %33 = arith.addf %31, %32 : vector<8x32xf32>
    %34 = vector.extract_strided_slice %6 {offsets = [0, 64], sizes = [8, 32], strides = [1, 1]} : vector<8x96xf32> to vector<8x32xf32>
    %35 = vector.extract_strided_slice %21 {offsets = [0, 0], sizes = [8, 16], strides = [1, 1]} : vector<8x32xf32> to vector<8x16xf32>
    %c0_12 = arith.constant 0 : index
    %c0_13 = arith.constant 0 : index
    %c0_14 = arith.constant 0 : index
    %c0_15 = arith.constant 0 : index
    %36 = vector.load %arg8[%c0_12, %c0_13, %c0_14, %c0_15] : memref<1x2x8x16xf32, #tpu.memory_space<vmem>>, vector<1x1x8x16xf32>
    %37 = vector.shape_cast %36 : vector<1x1x8x16xf32> to vector<8x16xf32>
    %38 = vector.shape_cast %35 : vector<8x16xf32> to vector<1x1x8x16xf32>
    tpu.vector_store %arg8[%c0_12, %c0_13, %c0_14, %c0_15], %38 {strides = array<i32>} : memref<1x2x8x16xf32, #tpu.memory_space<vmem>>, vector<1x1x8x16xf32>,
    %39 = vector.extract_strided_slice %33 {offsets = [0, 0], sizes = [8, 16], strides = [1, 1]} : vector<8x32xf32> to vector<8x16xf32>
    %c0_16 = arith.constant 0 : index
    %c0_17 = arith.constant 0 : index
    %c0_18 = arith.constant 0 : index
    %c0_19 = arith.constant 0 : index
    %40 = vector.load %arg9[%c0_16, %c0_17, %c0_18, %c0_19] : memref<1x2x8x16xf32, #tpu.memory_space<vmem>>, vector<1x1x8x16xf32>
    %41 = vector.shape_cast %40 : vector<1x1x8x16xf32> to vector<8x16xf32>
    %42 = vector.shape_cast %39 : vector<8x16xf32> to vector<1x1x8x16xf32>
    tpu.vector_store %arg9[%c0_16, %c0_17, %c0_18, %c0_19], %42 {strides = array<i32>} : memref<1x2x8x16xf32, #tpu.memory_space<vmem>>, vector<1x1x8x16xf32>,
    %43 = vector.extract_strided_slice %34 {offsets = [0, 0], sizes = [8, 16], strides = [1, 1]} : vector<8x32xf32> to vector<8x16xf32>
    %c0_20 = arith.constant 0 : index
    %c0_21 = arith.constant 0 : index
    %c0_22 = arith.constant 0 : index
    %c0_23 = arith.constant 0 : index
    %44 = vector.load %arg10[%c0_20, %c0_21, %c0_22, %c0_23] : memref<1x2x8x16xf32, #tpu.memory_space<vmem>>, vector<1x1x8x16xf32>
    %45 = vector.shape_cast %44 : vector<1x1x8x16xf32> to vector<8x16xf32>
    %46 = vector.shape_cast %43 : vector<8x16xf32> to vector<1x1x8x16xf32>
    tpu.vector_store %arg10[%c0_20, %c0_21, %c0_22, %c0_23], %46 {strides = array<i32>} : memref<1x2x8x16xf32, #tpu.memory_space<vmem>>, vector<1x1x8x16xf32>,
    %47 = vector.extract_strided_slice %21 {offsets = [0, 16], sizes = [8, 16], strides = [1, 1]} : vector<8x32xf32> to vector<8x16xf32>
    %c0_24 = arith.constant 0 : index
    %c1 = arith.constant 1 : index
    %c0_25 = arith.constant 0 : index
    %c0_26 = arith.constant 0 : index
    %48 = vector.load %arg8[%c0_24, %c1, %c0_25, %c0_26] : memref<1x2x8x16xf32, #tpu.memory_space<vmem>>, vector<1x1x8x16xf32>
    %49 = vector.shape_cast %48 : vector<1x1x8x16xf32> to vector<8x16xf32>
    %50 = vector.shape_cast %47 : vector<8x16xf32> to vector<1x1x8x16xf32>
    tpu.vector_store %arg8[%c0_24, %c1, %c0_25, %c0_26], %50 {strides = array<i32>} : memref<1x2x8x16xf32, #tpu.memory_space<vmem>>, vector<1x1x8x16xf32>,
    %51 = vector.extract_strided_slice %33 {offsets = [0, 16], sizes = [8, 16], strides = [1, 1]} : vector<8x32xf32> to vector<8x16xf32>
    %c0_27 = arith.constant 0 : index
    %c1_28 = arith.constant 1 : index
    %c0_29 = arith.constant 0 : index
    %c0_30 = arith.constant 0 : index
    %52 = vector.load %arg9[%c0_27, %c1_28, %c0_29, %c0_30] : memref<1x2x8x16xf32, #tpu.memory_space<vmem>>, vector<1x1x8x16xf32>
    %53 = vector.shape_cast %52 : vector<1x1x8x16xf32> to vector<8x16xf32>
    %54 = vector.shape_cast %51 : vector<8x16xf32> to vector<1x1x8x16xf32>
    tpu.vector_store %arg9[%c0_27, %c1_28, %c0_29, %c0_30], %54 {strides = array<i32>} : memref<1x2x8x16xf32, #tpu.memory_space<vmem>>, vector<1x1x8x16xf32>,
    %55 = vector.extract_strided_slice %34 {offsets = [0, 16], sizes = [8, 16], strides = [1, 1]} : vector<8x32xf32> to vector<8x16xf32>
    %c0_31 = arith.constant 0 : index
    %c1_32 = arith.constant 1 : index
    %c0_33 = arith.constant 0 : index
    %c0_34 = arith.constant 0 : index
    %56 = vector.load %arg10[%c0_31, %c1_32, %c0_33, %c0_34] : memref<1x2x8x16xf32, #tpu.memory_space<vmem>>, vector<1x1x8x16xf32>
    %57 = vector.shape_cast %56 : vector<1x1x8x16xf32> to vector<8x16xf32>
    %58 = vector.shape_cast %55 : vector<8x16xf32> to vector<1x1x8x16xf32>
    tpu.vector_store %arg10[%c0_31, %c1_32, %c0_33, %c0_34], %58 {strides = array<i32>} : memref<1x2x8x16xf32, #tpu.memory_space<vmem>>, vector<1x1x8x16xf32>,
    return
  }
  func.func @transform_0(%arg0: i32, %arg1: i32) -> (i32, i32, i32) {
    %c0_i32 = arith.constant 0 : i32
    %c0_i32_0 = arith.constant 0 : i32
    return %arg0, %arg1, %c0_i32 : i32, i32, i32
  }
  func.func @transform_1(%arg0: i32, %arg1: i32) -> (i32, i32) {
    %c0_i32 = arith.constant 0 : i32
    %c0_i32_0 = arith.constant 0 : i32
    return %arg1, %c0_i32 : i32, i32
  }
  func.func @transform_2(%arg0: i32, %arg1: i32) -> (i32, i32) {
    %c0_i32 = arith.constant 0 : i32
    %c0_i32_0 = arith.constant 0 : i32
    return %arg1, %c0_i32 : i32, i32
  }
  func.func @transform_3(%arg0: i32, %arg1: i32) -> (i32, i32) {
    %c0_i32 = arith.constant 0 : i32
    %c0_i32_0 = arith.constant 0 : i32
    return %arg1, %c0_i32 : i32, i32
  }
  func.func @transform_4(%arg0: i32, %arg1: i32) -> (i32, i32) {
    %c0_i32 = arith.constant 0 : i32
    %c0_i32_0 = arith.constant 0 : i32
    %c0_i32_1 = arith.constant 0 : i32
    return %c0_i32, %c0_i32_0 : i32, i32
  }
  func.func @transform_5(%arg0: i32, %arg1: i32) -> (i32, i32) {
    %c0_i32 = arith.constant 0 : i32
    %c0_i32_0 = arith.constant 0 : i32
    %c0_i32_1 = arith.constant 0 : i32
    return %c0_i32, %c0_i32_0 : i32, i32
  }
  func.func @transform_6(%arg0: i32, %arg1: i32) -> (i32, i32, i32, i32) {
    %c0_i32 = arith.constant 0 : i32
    %c0_i32_0 = arith.constant 0 : i32
    %c0_i32_1 = arith.constant 0 : i32
    return %arg0, %c0_i32, %arg1, %c0_i32_0 : i32, i32, i32, i32
  }
  func.func @transform_7(%arg0: i32, %arg1: i32) -> (i32, i32, i32, i32) {
    %c0_i32 = arith.constant 0 : i32
    %c0_i32_0 = arith.constant 0 : i32
    %c0_i32_1 = arith.constant 0 : i32
    return %arg0, %c0_i32, %arg1, %c0_i32_0 : i32, i32, i32, i32
  }
  func.func @transform_8(%arg0: i32, %arg1: i32) -> (i32, i32, i32, i32) {
    %c0_i32 = arith.constant 0 : i32
    %c0_i32_0 = arith.constant 0 : i32
    %c0_i32_1 = arith.constant 0 : i32
    return %arg0, %c0_i32, %arg1, %c0_i32_0 : i32, i32, i32, i32
  }
}

</mosaic_0001>

<bundles_post_ra>
// kernel: tpu_custom_call.1
= control target key start
LH: loop header
LB: loop body
LE: loop exit
PB: predicated region body
PF: predicated region fallthrough
CT: control target
= control target key end

     0   :  { %s1885_s0 = inlined_call_operand.hbm [shape: f32[2,8,32], index: 0, kind: input, shape index: {}]   ;;  %s1886_s1 = inlined_call_operand.hbm [shape: f32[8,32], index: 1, kind: input, shape index: {}]   ;;  %s1887_s2 = inlined_call_operand.hbm [shape: f32[8,32], index: 2, kind: input, shape index: {}]   ;;  %s1888_s3 = inlined_call_operand.hbm [shape: f32[8,32], index: 3, kind: input, shape index: {}]   ;;  %s1889_s4 = inlined_call_operand.hbm [shape: f32[32,96], index: 4, kind: input, shape index: {}]   ;;  %s1890_s5 = inlined_call_operand.hbm [shape: f32[1,96], index: 5, kind: input, shape index: {}]   ;;  %s1891_s6 = inlined_call_operand.hbm [shape: f32[2,2,8,16], index: 6, kind: output, shape index: {0}]   ;;  %s1892_s7 = inlined_call_operand.hbm [shape: f32[2,2,8,16], index: 7, kind: output, shape index: {1}]   ;;  %s1893_s8 = inlined_call_operand.hbm [shape: f32[2,2,8,16], index: 8, kind: output, shape index: {2}]  }
   0x1   :  { %1902 = sst [smem:[#allocation23_spill]] %s1885_s0 }
   0x2   :  { %1903 = sst [smem:[#allocation24_spill]] %s1886_s1 }
   0x3   :  { %1904 = sst [smem:[#allocation25_spill]] %s1887_s2 }
   0x4   :  { %1905 = sst [smem:[#allocation26_spill]] %s1888_s3 }
   0x5   :  { %14 = vsyncpa [#allocation3], 0 }
   0x6   :  { %16 = vsyncpa [#allocation3 + $0x1], 0 }
   0x7   :  { %17 = vsyncpa [#allocation6], 0 }
   0x8   :  { %18 = vsyncpa [#allocation9], 0 }
   0x9   :  { %19 = vsyncpa [#allocation12], 0 }
   0xa   :  { %20 = vsyncpa [#allocation4], 0 }
   0xb   :  { %22 = vsyncpa [#allocation4 + $0x1], 0 }
   0xc   :  { %23 = vsyncpa [#allocation15], 0 }
   0xd   :  { %25 = vsyncpa [#allocation15 + $0x1], 0  ;;  %s1472_s27 = smov 0   ;;  %s1474_s28 = smov 0  }
   0xe   :  { %s1476_s29 = smov 0   ;;  %s1478_s30 = smov 0  }
   0xf   :  { %s1480_s9 = smov 0   ;;  %s1482_s10 = smov 0  }
  0x10 LB: > { %s1503_s11 = sadd.s32 4294967295, %s1398_s10   ;;  %p873_p0 = scmp.ge.s32.totalorder %s1398_s10, 1  ;;  %s1398_s10 = sphi %s1482_s10, %s31_s10   ;;  %s1394_s9 = sphi %s1480_s9, %s1937_s9   ;;  %s1390_s30 = sphi %s1478_s30, %s1936_s30   ;;  %s1386_s29 = sphi %s1476_s29, %s1935_s29   ;;  %s1382_s28 = sphi %s1474_s28, %s1934_s28   ;;  %s1378_s27 = sphi %s1472_s27, %s1933_s27  }
  0x11   : > { %p1894_p1 = scmp.eq.s32.totalorder %s1503_s11, 0  ;;  %p280_p2 = scmp.lt.s32.totalorder %s1398_s10, 3 }
  0x12   : > { %s1400_s13 = smov [#allocation5]   ;;  %s1401_s15 = smov [#allocation8]  }
  0x13   : > { %p1508_p3 = pnand %p873_p0, %p280_p2  ;;  %s295_s14 = sshll.u32 %s1400_s13, 4  ;;  %s296_s14 = int_to_ptr.vmem [resolvable:$true] %s295_s14 }
  0x14   : > { %s321_s16 = sshll.u32 %s1401_s15, 4  ;;  %s1402_s18 = smov [#allocation7]   ;;  %s1521_s16 = int_to_ptr.vmem [resolvable:$true] %s321_s16 }
  0x15   : > { %s1906_s12 = scalar_select %p1508_p3, 1, 0 }
  0x16   : > { %p961_p5 = pneg %p1508_p3  ;;  %s308_s19 = sshll.u32 %s1402_s18, 4  ;;  %s1523_s19 = int_to_ptr.vmem [resolvable:$true] %s308_s19 }
  0x17   : > { %s1908_s1 = sld [smem:[#allocation24_spill]] }
  0x18   : > { %p1517_p6 = pnand %p961_p5, %p1894_p1 }
  0x1a   : > { %p1533_p8 = pneg %p1517_p6 }
  0x1d   : > { %s1074_s22 = scalar_lea.hbm %s1908_s1, 128 }
  0x1e   : > { %p1075_p7 = scmp.ne.s32.totalorder %s1908_s1, %s1074_s22  ;;  %p1081_p11 = scmp.lt.u32.totalorder %s1074_s22, %s1908_s1 }
  0x20   : > { %p1077_p9 = pnand %p1533_p8, %p1075_p7 }
  0x22   : > { %p1078_p10 = pneg %p1077_p9 }
  0x24   : > { %p1083_p12 = pnand %p1081_p11, %p1078_p10 }
  0x26   : > { %1086 = shalt.err (!%p1083_p12)
}
  0x27   : > { %s1087_s15 = scalar_lea.vmem %s296_s14, 128  ;;  %p1095_p5 = scmp.lt.s32.totalorder %s296_s14, %s296_s14 }
  0x28   : > { %p1088_p13 = scmp.ne.s32.totalorder %s296_s14, %s1087_s15  ;;  %p1096_p4 = scmp.lt.s32.totalorder %s1087_s15, %s1087_s15 }
  0x2a   : > { %p1090_p0 = pnand %p1088_p13, %p1533_p8  ;;  %p1097_p1 = por %p1096_p4, %p1095_p5 }
  0x2c   : > { %p1091_p2 = pneg %p1090_p0 }
  0x2e   : > { %p1098_p3 = pnand %p1097_p1, %p1091_p2 }
  0x30   : > { %1101 = shalt.err (!%p1098_p3)
}
  0x31   : > { %964 = dma.hbm_to_vmem [thread:$0]  (!%p1517_p6), %s1908_s1, 128, %s296_s14, [#allocation6]  }
  0x32   : > { %s1910_s3 = sld [smem:[#allocation26_spill]] }
  0x38   : > { %s1102_s23 = scalar_lea.hbm %s1910_s3, 128 }
  0x39   : > { %p1103_p7 = scmp.ne.s32.totalorder %s1910_s3, %s1102_s23  ;;  %p1109_p1 = scmp.lt.u32.totalorder %s1102_s23, %s1910_s3 }
  0x3b   : > { %p1105_p9 = pnand %p1103_p7, %p1533_p8 }
  0x3d   : > { %p1106_p4 = pneg %p1105_p9 }
  0x3f   : > { %p1111_p3 = pnand %p1109_p1, %p1106_p4 }
  0x41   : > { %1114 = shalt.err (!%p1111_p3)
}
  0x42   : > { %s1115_s14 = scalar_lea.vmem %s1521_s16, 128  ;;  %p1123_p13 = scmp.lt.s32.totalorder %s1521_s16, %s1521_s16 }
  0x43   : > { %p1116_p10 = scmp.ne.s32.totalorder %s1521_s16, %s1115_s14  ;;  %p1124_p0 = scmp.lt.s32.totalorder %s1115_s14, %s1115_s14 }
  0x45   : > { %p1118_p11 = pnand %p1116_p10, %p1533_p8  ;;  %p1125_p2 = por %p1124_p0, %p1123_p13 }
  0x47   : > { %p1119_p12 = pneg %p1118_p11 }
  0x49   : > { %p1126_p5 = pnand %p1125_p2, %p1119_p12 }
  0x4b   : > { %1129 = shalt.err (!%p1126_p5)
}
  0x4c   : > { %970 = dma.hbm_to_vmem [thread:$0]  (!%p1517_p6), %s1910_s3, 128, %s1521_s16, [#allocation9]  }
  0x4d   : > { %s1911_s2 = sld [smem:[#allocation25_spill]] }
  0x53   : > { %s1130_s23 = scalar_lea.hbm %s1911_s2, 128 }
  0x54   : > { %p1131_p7 = scmp.ne.s32.totalorder %s1911_s2, %s1130_s23  ;;  %p1137_p1 = scmp.lt.u32.totalorder %s1130_s23, %s1911_s2 }
  0x56   : > { %p1133_p9 = pnand %p1131_p7, %p1533_p8 }
  0x58   : > { %p1134_p4 = pneg %p1133_p9 }
  0x5a   : > { %p1139_p3 = pnand %p1137_p1, %p1134_p4 }
  0x5c   : > { %1142 = shalt.err (!%p1139_p3)
}
  0x5d   : > { %s1143_s16 = scalar_lea.vmem %s1523_s19, 128  ;;  %p1151_p13 = scmp.lt.s32.totalorder %s1523_s19, %s1523_s19 }
  0x5e   : > { %p1144_p10 = scmp.ne.s32.totalorder %s1523_s19, %s1143_s16  ;;  %p1152_p0 = scmp.lt.s32.totalorder %s1143_s16, %s1143_s16 }
  0x60   : > { %p1146_p11 = pnand %p1144_p10, %p1533_p8  ;;  %p1153_p2 = por %p1152_p0, %p1151_p13 }
  0x62   : > { %p1147_p12 = pneg %p1146_p11 }
  0x64   : > { %p1154_p5 = pnand %p1153_p2, %p1147_p12 }
  0x66   : > { %1157 = shalt.err (!%p1154_p5)
}
  0x67   : > { %967 = dma.hbm_to_vmem [thread:$0]  (!%p1517_p6), %s1911_s2, 128, %s1523_s19, [#allocation6]  }
  0x68   : > { %s1403_s20 = smov [#allocation10]   ;;  %s1158_s24 = scalar_lea.hbm %s1889_s4, 512 }
  0x69   : > { %s331_s21 = sshll.u32 %s1403_s20, 4  ;;  %p1159_p7 = scmp.ne.s32.totalorder %s1889_s4, %s1158_s24  ;;  %s332_s21 = int_to_ptr.vmem [resolvable:$true] %s331_s21 }
  0x6a   : > { %p1165_p1 = scmp.lt.u32.totalorder %s1158_s24, %s1889_s4 }
  0x6b   : > { %p1161_p9 = pnand %p1159_p7, %p1533_p8 }
  0x6d   : > { %p1162_p4 = pneg %p1161_p9 }
  0x6f   : > { %p1167_p3 = pnand %p1165_p1, %p1162_p4 }
  0x71   : > { %1170 = shalt.err (!%p1167_p3)
}
  0x72   : > { %s1171_s19 = scalar_lea.vmem %s332_s21, 512  ;;  %p1179_p13 = scmp.lt.s32.totalorder %s332_s21, %s332_s21 }
  0x73   : > { %p1172_p10 = scmp.ne.s32.totalorder %s332_s21, %s1171_s19  ;;  %p1180_p0 = scmp.lt.s32.totalorder %s1171_s19, %s1171_s19 }
  0x75   : > { %p1174_p11 = pnand %p1172_p10, %p1533_p8  ;;  %p1181_p2 = por %p1180_p0, %p1179_p13 }
  0x77   : > { %p1175_p12 = pneg %p1174_p11 }
  0x79   : > { %p1182_p5 = pnand %p1181_p2, %p1175_p12 }
  0x7b   : > { %1185 = shalt.err (!%p1182_p5)
}
  0x7c   : > { %s1404_s14 = smov 128   ;;  %s1405_s18 = smov 8  }
  0x7d   : > { %973 = dma.hbm_to_vmem [thread:$0]  (!%p1517_p6), %s1889_s4, 512, %s332_s21, [#allocation9], %s1404_s14, %s1404_s14, %s1405_s18  }
  0x7e   : > { %s1406_s23 = smov [#allocation11]   ;;  %s1186_s15 = scalar_lea.hbm %s1890_s5, 16 }
  0x7f   : > { %s345_s24 = sshll.u32 %s1406_s23, 4  ;;  %p1187_p7 = scmp.ne.s32.totalorder %s1890_s5, %s1186_s15  ;;  %s346_s24 = int_to_ptr.vmem [resolvable:$true] %s345_s24 }
  0x80   : > { %p1193_p1 = scmp.lt.u32.totalorder %s1186_s15, %s1890_s5 }
  0x81   : > { %p1189_p9 = pnand %p1187_p7, %p1533_p8 }
  0x83   : > { %p1190_p4 = pneg %p1189_p9 }
  0x85   : > { %p1195_p3 = pnand %p1193_p1, %p1190_p4 }
  0x87   : > { %1198 = shalt.err (!%p1195_p3)
}
  0x88   : > { %s1199_s21 = scalar_lea.vmem %s346_s24, 16  ;;  %s1206_s14 = scalar_lea.vmem %s346_s24, 32 }
  0x89   : > { %p1200_p10 = scmp.ne.s32.totalorder %s346_s24, %s1199_s21  ;;  %p1207_p13 = scmp.lt.s32.totalorder %s346_s24, %s346_s24 }
  0x8a   : > { %p1208_p0 = scmp.lt.s32.totalorder %s1206_s14, %s1199_s21 }
  0x8b   : > { %p1202_p11 = pnand %p1200_p10, %p1533_p8 }
  0x8c   : > { %p1209_p2 = por %p1208_p0, %p1207_p13 }
  0x8d   : > { %p1203_p12 = pneg %p1202_p11 }
  0x8f   : > { %p1210_p5 = pnand %p1209_p2, %p1203_p12 }
  0x91   : > { %1213 = shalt.err (!%p1210_p5)
}
  0x92   : > { %976 = dma.hbm_to_vmem [thread:$0]  (!%p1517_p6), %s1890_s5, 16, %s346_s24, [#allocation12]  }
  0x93   : > { %s1896_s1 = sadd.s32 4294967294, %s1398_s10   ;;  %s43_s2 = sadd.s32 1, %s1394_s9 }
  0x94   : > { %s52_s17 = sadd.s32 1, %s1386_s29  ;;  %p45_p8 = scmp.ge.s32.totalorder %s43_s2, 2 }
  0x95   : > { %p59_p7 = scmp.ne.s32.totalorder %s1386_s29, %s1382_s28  ;;  %p60_p9 = scmp.eq.s32.totalorder %s1398_s10, 0 }
  0x96   : > { %p65_p4 = scmp.ne.s32.totalorder %s1382_s28, %s1378_s27  ;;  %s1939_s2 = smov (%p45_p8, %s43_s2), 0 }
  0x97   : > { %p1641_p1 = por %p60_p9, %p59_p7  ;;  %p1913_p3 = scmp.eq.s32.totalorder %s1503_s11, 0 }
  0x98   : > { %s47_s23 = ssub.s32 %s1394_s9, %s1939_s2  ;;  %p211_p10 = scmp.eq.s32.totalorder %s1503_s11, 1 }
  0x99   : > { %p1647_p6 = por %p1913_p3, %p65_p4  ;;  %p50_p11 = scmp.eq.s32.totalorder %s47_s23, 0 }
  0x9a   : > { %p217_p12 = scmp.eq.s32.totalorder %s1896_s1, 1  ;;  %p1656_p13 = por %p211_p10, %p59_p7 }
  0x9b   : > { %p996_p0 = scmp.lt.s32.totalorder %s1398_s10, 2  ;;  %s356_s15 = sand.u32 1, %s1386_s29  }
  0x9c   : > { %s1915_s24 = scalar_select %p1656_p13, 1, 0 }
  0x9d   : > { %s1662_s26 = scalar_select %p50_p11, %s1386_s29, %s52_s17  }
  0x9e   : > { %p1664_p2 = por %p217_p12, %p65_p4  ;;  %s880_s16 = sshll.u32 %s356_s15, 3 }
  0x9f   : > { %s881_s19 = sshll.u32 %s1394_s9, 7  ;;  %s1917_s0 = sld [smem:[#allocation23_spill]] }
  0xa0   : > { %s1916_s13 = scalar_select %p1664_p2, 1, 0 }
  0xa1   : > { %s360_s20 = scalar_lea.vmem [#allocation2], %s880_s16  ;;  %p1679_p5 = pnand %p996_p0, %p1641_p1 }
  0xa2   : > { %s368_s23 = sshll.u32 %s360_s20, 4  ;;  %s357_s1 = scalar_lea.sflag [#allocation3], %s356_s15  ;;  %s1675_s23 = int_to_ptr.vmem [resolvable:$true] %s368_s23 }
  0xa3   : > { %p1216_p7 = pneg %p1679_p5 }
  0xa5   : > { %s1673_s18 = scalar_lea.hbm %s1917_s0, %s881_s19  ;;  %s1219_s21 = scalar_lea.hbm %s1917_s0, 256 }
  0xa6   : > { %s1214_s3 = scalar_lea.hbm %s1673_s18, 128  ;;  %p1220_p1 = scmp.lt.u32.totalorder %s1673_s18, %s1917_s0 }
  0xa7   : > { %p1215_p8 = scmp.ne.s32.totalorder %s1673_s18, %s1214_s3  ;;  %p1221_p3 = scmp.lt.u32.totalorder %s1219_s21, %s1214_s3 }
  0xa8   : > { %p1223_p11 = scmp.lt.u32.totalorder %s1214_s3, %s1673_s18 }
  0xa9   : > { %p1217_p9 = pnand %p1216_p7, %p1215_p8  ;;  %p1222_p10 = por %p1221_p3, %p1220_p1 }
  0xab   : > { %p1218_p4 = pneg %p1217_p9  ;;  %p1224_p12 = por %p1223_p11, %p1222_p10 }
  0xad   : > { %p1225_p0 = pnand %p1224_p12, %p1218_p4 }
  0xaf   : > { %1228 = shalt.err (!%p1225_p0)
}
  0xb0   : > { %s1229_s15 = scalar_lea.vmem %s1675_s23, 128  ;;  %s1407_s20 = smov [#allocation2]  }
  0xb1   : > { %p1230_p8 = scmp.ne.s32.totalorder %s1675_s23, %s1229_s15  ;;  %s1234_s16 = sshll.u32 %s1407_s20, 4  ;;  %s1235_s16 = int_to_ptr.vmem [resolvable:$false] %s1234_s16 }
  0xb2   : > { %s1236_s19 = scalar_lea.vmem %s1235_s16, 256  ;;  %p1237_p13 = scmp.lt.s32.totalorder %s1675_s23, %s1235_s16 }
  0xb3   : > { %p1232_p9 = pnand %p1230_p8, %p1216_p7  ;;  %p1238_p1 = scmp.lt.s32.totalorder %s1236_s19, %s1229_s15 }
  0xb5   : > { %p1233_p2 = pneg %p1232_p9  ;;  %p1239_p3 = por %p1238_p1, %p1237_p13 }
  0xb7   : > { %p1240_p10 = pnand %p1239_p3, %p1233_p2 }
  0xb9   : > { %1243 = shalt.err (!%p1240_p10)
}
  0xba   : > { %980 = dma.hbm_to_vmem [thread:$0]  (!%p1679_p5), %s1673_s18, 128, %s1675_s23, %s357_s1  }
  0xbb   : > { %p1919_p4 = scmp.ne.s32.totalorder %s1906_s12, 0 }
  0xbc   : > { %s1711_s3 = sand.u32 (!%p1919_p4), 1, %s1382_s28  }
  0xbd   : > { %377 = sbr.rel (%p1919_p4) target bundleno = 850 (0x352), region = 44  ;;  %s883_s21 = sshll.u32 (!%p1919_p4), %s1711_s3, 3 }
  0xbe   : > { %s380_s25 = scalar_lea.sflag (!%p1919_p4), [#allocation3], %s1711_s3  ;;  %s383_s14 = scalar_lea.vmem (!%p1919_p4), [#allocation2], %s883_s21 }
  0xc4   : > { %1353 = dma.done.wait (%p1647_p6), %s380_s25, 128  }
  0xc5   : > { %1355 = vsyncadd (%p1647_p6), %s380_s25, 4294967168  ;;  %p1920_p13 = scmp.eq.s32.totalorder %s1503_s11, 0 }
  0xc7   : > { %1357 = dma.done.wait (%p1920_p13), [#allocation6], 256   ;;  %p1921_p2 = pmov %p1920_p13 }
  0xc9   : > { %1359 = vsyncadd (%p1921_p2), [#allocation6], 4294967040  ;;  %p1922_p5 = pmov %p1921_p2 }
  0xca   : > { %p1923_p7 = pmov %p1921_p2 }
  0xcb   : > { %1361 = dma.done.wait (%p1922_p5), [#allocation9], 640  }
  0xcc   : > { %1363 = vsyncadd (%p1923_p7), [#allocation9], 4294966656  ;;  %p1924_p11 = pmov %p1921_p2 }
  0xcd   : > { %p1925_p12 = pmov %p1921_p2 }
  0xce   : > { %1365 = dma.done.wait (%p1924_p11), [#allocation12], 16  }
  0xcf   : > { %1367 = vsyncadd (%p1925_p12), [#allocation12], 4294967280  ;;  %v1408_v0 = vmov 0.0|0.0   ;;  %vm1409_vm0 = vmmov 0   ;;  %v1410_v1 = vmov 0.0   ;;  %v447_v2 = vld [vmem:[#allocation10] sm:$0xff] }
  0xd0   : > { %927 = vmatprep.subr.bf16.mxu0 %v1408_v0  ;;  %924 = vmatprep.mubr.msk.f32.mxu0 %vm1409_vm0, %v1410_v1  ;;  %v448_v3 = vld [vmem:[#allocation10 + $0x8] sm:$0xff]  ;;  %v449_v4 = vld [vmem:[#allocation10 + $0x10] sm:$0xff]  ;;  %v450_v6 = vld [vmem:[#allocation10 + $0x18] sm:$0xff]  ;;  %vm458_vm1 = vcmask 261120   ;;  %s1411_s12 = smov 104   ;;  %s1412_s1 = smov 120  }
  0xd1   : > { %v928_v5 = vpack.c.bf16 %v448_v3, %v447_v2  ;;  %v931_v7 = vpack.c.bf16 %v450_v6, %v449_v4  ;;  %v446_v8 = vld [vmem:[%s383_s14] sm:$0xff]  ;;  %s1413_s22 = smov 72   ;;  %s1414_s18 = smov 88   ;;  %v532_v13 = vld [vmem:[#allocation5] sm:$0xff]  ;;  %vm550_vm2 = vcmask 64512   ;;  %vm542_vm3 = vcmask 195584  }
  0xd2   : > { %v892_v9 = vld [vmem:[#allocation11] ss:$0 sm:$0xff]  ;;  %s1415_s23 = smov 32   ;;  %s1416_s17 = smov 24   ;;  %v534_v16 = vld [vmem:[#allocation8] sm:$0xff]  ;;  %v533_v17 = vld [vmem:[#allocation7] sm:$0xff] }
  0xd3   : > { %929 = vmatpush3.bf16.msra.mxu0 %v928_v5  ;;  %s1898_s15 = smov 8   ;;  %s1418_s20 = smov 64   ;;  %vm582_vm4 = vcmask 130048  }
  0xd4   : > { %930 = vmatprep.subr.bf16.mxu0 %v1408_v0  ;;  %s889_s16 = sshll.u32 %s1711_s3, 4  ;;  %s1419_s25 = smov 80  }
  0xd5   : > { %s1735_s19 = scalar_lea.vmem [#allocation13], %s889_s16  ;;  %s1739_s21 = scalar_lea.vmem [#allocation16], %s889_s16 }
  0xd6   : > { %s1420_s14 = smov 96   ;;  %p1926_p0 = scmp.ne.s32.totalorder %s1915_s24, 0 }
  0xd7   : > { %932 = vmatpush3.bf16.msra.mxu0 %v931_v7 }
  0xda   : > { %925 = vmatmul.mubr.msk.f32.vlgmr.msra.gmra.mrb[0].mxu0 %vm458_vm1, %v446_v8 }
 0x1ad   : > { %v528_v10 = vpop.f32.mrb[0].mxu0 }
 0x1ae   : > { %v529_v11 = vadd.f32 %v892_v9, %v528_v10  ;;  %v926_v12 = vpop.f32.mrb[1].mxu0 }
 0x1b0   : > { %544 = vrot.lane.b32.xlu1 %v529_v11, %s1411_s12  ;;  %536 = vrot.lane.b32.xlu0 %v529_v11, %s1412_s1  ;;  %v552_v27 = vmul.f32 %v532_v13, %v529_v11  ;;  %s1421_s12 = smov 48   ;;  %s1422_s1 = smov 112  }
 0x1b4   : > { %561 = vrot.lane.b32.xlu1 %v529_v11, %s1413_s22  ;;  %557 = vrot.lane.b32.xlu0 %v529_v11, %s1414_s18  ;;  %s438_s22 = scalar_lea.vmem [#allocation14], %s889_s16 }
 0x1b5   : > { %s651_s18 = sshll.u32 %s438_s22, 4  ;;  %s1747_s18 = int_to_ptr.vmem [resolvable:$true] %s651_s18 }
 0x1b8   : > { %566 = vrot.lane.b32.xlu1 %v532_v13, %s1415_s23  ;;  %539 = vrot.lane.b32.xlu0 %v529_v11, %s1416_s17  ;;  %s1745_s17 = sshll.u32 %s1390_s30, 8 }
 0x1bc   : > { %547 = vrot.lane.b32.xlu0 %v529_v11, %s1898_s15  ;;  %s1423_s15 = smov [#allocation14]  }
 0x222   : > { %v545_v14 = vpop.permute.xlu1 %544  ;;  %v537_v15 = vpop.permute.xlu0 %536 }
 0x226   : > { %v562_v18 = vpop.permute.xlu1 %561  ;;  %v558_v19 = vpop.permute.xlu0 %557 }
 0x227   : > { %v564_v20 = vsel %vm550_vm2, %v562_v18, %v545_v14  ;;  %v560_v21 = vsel %vm542_vm3, %v558_v19, %v537_v15 }
 0x228   : > { %v576_v22 = vmul.f32 %v564_v20, %v534_v16  ;;  %v570_v23 = vmul.f32 %v560_v21, %v533_v17 }
 0x22a   : > { %578 = vrot.lane.b32.xlu0 %v576_v22, %s1415_s23  ;;  %572 = vrot.lane.b32.xlu1 %v570_v23, %s1415_s23  ;;  %v540_v24 = vpop.permute.xlu0 %539  ;;  %v567_v33 = vpop.permute.xlu1 %566  ;;  %s614_s23 = sand.u32 1, %s1503_s11   ;;  %s1244_s11 = scalar_lea.vmem %s1747_s18, 256 }
 0x22b   : > { %v543_v25 = vsel %vm542_vm3, %v537_v15, %v540_v24  ;;  %v569_v34 = vmul.f32 %v567_v33, %v529_v11  ;;  %s1761_s30 = scalar_lea.sflag [#allocation15], %s614_s23  ;;  %p1245_p6 = scmp.ne.s32.totalorder %s1747_s18, %s1244_s11 }
 0x22c   : > { %v553_v26 = vmul.f32 %v543_v25, %v533_v17 }
 0x22d   : > { %p1246_p8 = pnand %p1245_p6, %p1926_p0 }
 0x22e   : > { %589 = vrot.lane.b32.xlu1 %v529_v11, %s1418_s20  ;;  %v548_v28 = vpop.permute.xlu0 %547  ;;  %v554_v30 = vadd.f32 %v553_v26, %v552_v27  ;;  %s634_s20 = sshll.u32 %s1735_s19, 4  ;;  %s1759_s20 = int_to_ptr.vmem [resolvable:$true] %s634_s20 }
 0x22f   : > { %v551_v29 = vsel %vm550_vm2, %v545_v14, %v548_v28  ;;  %p1247_p9 = pneg %p1246_p8 }
 0x230   : > { %v555_v31 = vmul.f32 %v551_v29, %v534_v16 }
 0x232   : > { %v556_v32 = vadd.f32 %v555_v31, %v554_v30 }
 0x234   : > { %583 = vst.msk [vmem:[%s1735_s19] sm:$0xff] %vm582_vm4, %v556_v32 }
 0x29c   : > { %v573_v35 = vpop.permute.xlu1 %572  ;;  %v579_v37 = vpop.permute.xlu0 %578 }
 0x29d   : > { %v575_v36 = vadd.f32 %v573_v35, %v569_v34 }
 0x29f   : > { %v581_v38 = vadd.f32 %v579_v37, %v575_v36 }
 0x2a0   : > { %v590_v39 = vpop.permute.xlu1 %589 }
 0x2a1   : > { %592 = vst.msk [vmem:[%s1739_s21] sm:$0xff] %vm582_vm4, %v590_v39  ;;  %599 = vrot.lane.b32.xlu0 %v581_v38, %s1419_s25  ;;  %585 = vrot.lane.b32.xlu1 %v581_v38, %s1420_s14  ;;  %s1754_s14 = scalar_lea.hbm %s1892_s7, %s1745_s17 }
 0x2a5   : > { %604 = vrot.lane.b32.xlu1 %v529_v11, %s1421_s12  ;;  %594 = vrot.lane.b32.xlu0 %v556_v32, %s1422_s1  ;;  %s1248_s12 = sshll.u32 %s1423_s15, 4  ;;  %s1249_s12 = int_to_ptr.vmem [resolvable:$false] %s1248_s12 }
 0x2a6   : > { %s1250_s1 = scalar_lea.vmem %s1249_s12, 512  ;;  %p1251_p1 = scmp.lt.s32.totalorder %s1747_s18, %s1249_s12 }
 0x2a7   : > { %p1252_p3 = scmp.lt.s32.totalorder %s1250_s1, %s1244_s11 }
 0x2a9   : > { %p1253_p10 = por %p1252_p3, %p1251_p1 }
 0x2ab   : > { %p1254_p4 = pnand %p1253_p10, %p1247_p9 }
 0x313   : > { %v600_v40 = vpop.permute.xlu0 %599  ;;  %v586_v41 = vpop.permute.xlu1 %585 }
 0x314   : > { %895 = vst.msk [vmem:[%s438_s22 + $0x8] sm:$0xff] %vm582_vm4, %v600_v40  ;;  %588 = vst.msk [vmem:[%s438_s22] sm:$0xff] %vm582_vm4, %v586_v41 }
 0x315   : > { %1257 = shalt.err (!%p1254_p4)
}
 0x316   : > { %s1258_s22 = scalar_lea.hbm %s1754_s14, 256  ;;  %s1262_s15 = scalar_lea.hbm %s1892_s7, 512 }
 0x317   : > { %p1259_p13 = scmp.ne.s32.totalorder %s1754_s14, %s1258_s22  ;;  %p1263_p7 = scmp.lt.u32.totalorder %s1754_s14, %s1892_s7 }
 0x318   : > { %p1264_p11 = scmp.lt.u32.totalorder %s1262_s15, %s1258_s22  ;;  %p1266_p6 = scmp.lt.u32.totalorder %s1258_s22, %s1754_s14 }
 0x319   : > { %p1260_p2 = pnand %p1259_p13, %p1926_p0 }
 0x31a   : > { %p1265_p12 = por %p1264_p11, %p1263_p7 }
 0x31b   : > { %p1261_p5 = pneg %p1260_p2 }
 0x31c   : > { %p1267_p8 = por %p1266_p6, %p1265_p12 }
 0x31e   : > { %p1268_p9 = pnand %p1267_p8, %p1261_p5 }
 0x320   : > { %1271 = shalt.err (!%p1268_p9)
}
 0x321   : > { %s1900_s11 = smov 128   ;;  %s1927_s1 = smov 8   ;;  %v605_v42 = vpop.permute.xlu1 %604  ;;  %v595_v43 = vpop.permute.xlu0 %594 }
 0x322   : > { %956 = dma.vmem_to_hbm [thread:$0]  (%p1926_p0), %s1747_s18, 256, %s1754_s14, %s1761_s30, %s1900_s11, %s1900_s11, %s1927_s1  }
 0x323   : > { %s1792_s23 = scalar_lea.hbm %s1891_s6, %s1745_s17  ;;  %s1928_s25 = sshll.u32 %s1739_s21, 4  ;;  %896 = vst.msk [vmem:[%s1739_s21 + $0x8] sm:$0xff] %vm582_vm4, %v605_v42  ;;  %894 = vst.msk [vmem:[%s1735_s19 + $0x8] sm:$0xff] %vm582_vm4, %v595_v43  ;;  %s1796_s25 = int_to_ptr.vmem [resolvable:$true] %s1928_s25 }
 0x324   : > { %s1802_s0 = scalar_lea.hbm %s1893_s8, %s1745_s17  ;;  %s610_s18 = scalar_lea.sflag [#allocation4], %s1711_s3 }
 0x325   : > { %s1272_s14 = scalar_lea.vmem %s1759_s20, 256  ;;  %s1425_s16 = smov [#allocation13]  }
 0x326   : > { %p1273_p1 = scmp.ne.s32.totalorder %s1759_s20, %s1272_s14  ;;  %s1276_s22 = sshll.u32 %s1425_s16, 4  ;;  %s1277_s22 = int_to_ptr.vmem [resolvable:$false] %s1276_s22 }
 0x327   : > { %s1278_s11 = scalar_lea.vmem %s1277_s22, 512  ;;  %p1279_p4 = scmp.lt.s32.totalorder %s1759_s20, %s1277_s22 }
 0x328   : > { %p1274_p3 = pnand %p1273_p1, %p1926_p0  ;;  %p1280_p13 = scmp.lt.s32.totalorder %s1278_s11, %s1272_s14 }
 0x32a   : > { %p1275_p10 = pneg %p1274_p3  ;;  %p1281_p2 = por %p1280_p13, %p1279_p4 }
 0x32c   : > { %p1282_p5 = pnand %p1281_p2, %p1275_p10 }
 0x32e   : > { %1285 = shalt.err (!%p1282_p5)
}
 0x32f   : > { %s1286_s19 = scalar_lea.hbm %s1792_s23, 256  ;;  %s1290_s15 = scalar_lea.hbm %s1891_s6, 512 }
 0x330   : > { %p1287_p7 = scmp.ne.s32.totalorder %s1792_s23, %s1286_s19  ;;  %p1291_p6 = scmp.lt.u32.totalorder %s1792_s23, %s1891_s6 }
 0x331   : > { %p1292_p8 = scmp.lt.u32.totalorder %s1290_s15, %s1286_s19  ;;  %p1294_p1 = scmp.lt.u32.totalorder %s1286_s19, %s1792_s23 }
 0x332   : > { %p1288_p11 = pnand %p1287_p7, %p1926_p0 }
 0x333   : > { %p1293_p9 = por %p1292_p8, %p1291_p6 }
 0x334   : > { %p1289_p12 = pneg %p1288_p11 }
 0x335   : > { %p1295_p3 = por %p1294_p1, %p1293_p9 }
 0x337   : > { %p1296_p10 = pnand %p1295_p3, %p1289_p12 }
 0x339   : > { %1299 = shalt.err (!%p1296_p10)
}
 0x33a   : > { %s1929_s11 = smov 128   ;;  %s1300_s14 = scalar_lea.vmem %s1796_s25, 256 }
 0x33b   : > { %955 = dma.vmem_to_hbm [thread:$0]  (%p1926_p0), %s1759_s20, 256, %s1792_s23, %s610_s18, %s1929_s11, %s1929_s11, %s1927_s1  }
 0x33c   : > { %p1301_p4 = scmp.ne.s32.totalorder %s1796_s25, %s1300_s14  ;;  %s1426_s22 = smov [#allocation16]  }
 0x33d   : > { %s1304_s19 = sshll.u32 %s1426_s22, 4  ;;  %s1305_s19 = int_to_ptr.vmem [resolvable:$false] %s1304_s19 }
 0x33e   : > { %p1302_p13 = pnand %p1301_p4, %p1926_p0  ;;  %s1306_s21 = scalar_lea.vmem %s1305_s19, 512 }
 0x33f   : > { %p1307_p5 = scmp.lt.s32.totalorder %s1796_s25, %s1305_s19  ;;  %p1308_p7 = scmp.lt.s32.totalorder %s1306_s21, %s1300_s14 }
 0x340   : > { %p1303_p2 = pneg %p1302_p13 }
 0x341   : > { %p1309_p11 = por %p1308_p7, %p1307_p5 }
 0x343   : > { %p1310_p12 = pnand %p1309_p11, %p1303_p2 }
 0x345   : > { %1313 = shalt.err (!%p1310_p12)
}
 0x346   : > { %s1314_s3 = scalar_lea.hbm %s1802_s0, 256  ;;  %s1318_s18 = scalar_lea.hbm %s1893_s8, 512 }
 0x347   : > { %p1315_p6 = scmp.ne.s32.totalorder %s1802_s0, %s1314_s3  ;;  %p1319_p1 = scmp.lt.u32.totalorder %s1802_s0, %s1893_s8 }
 0x348   : > { %p1320_p3 = scmp.lt.u32.totalorder %s1318_s18, %s1314_s3  ;;  %p1322_p4 = scmp.lt.u32.totalorder %s1314_s3, %s1802_s0 }
 0x349   : > { %p1316_p8 = pnand %p1315_p6, %p1926_p0 }
 0x34a   : > { %p1321_p10 = por %p1320_p3, %p1319_p1 }
 0x34b   : > { %p1317_p9 = pneg %p1316_p8 }
 0x34c   : > { %p1323_p13 = por %p1322_p4, %p1321_p10 }
 0x34e   : > { %p1324_p2 = pnand %p1323_p13, %p1317_p9 }
 0x350   : > { %1327 = shalt.err (!%p1324_p2)
}
 0x351   : > { %957 = dma.vmem_to_hbm [thread:$0]  (%p1926_p0), %s1796_s25, 256, %s1802_s0, %s1761_s30, %s1929_s11, %s1929_s11, %s1927_s1  }
 0x352 PF: > { %s683_s12 = sand.u32 1, %s1378_s27   ;;  %p1930_p5 = scmp.ne.s32.totalorder %s1916_s13, 0 }
 0x353   : > { %p1931_p7 = scmp.ge.s32.totalorder %s1398_s10, 2  ;;  %s684_s16 = scalar_lea.sflag [#allocation4], %s683_s12 }
 0x355   : > { %p982_p11 = pnand %p1931_p7, %p1930_p5 }
 0x357   : > { %1369 = dma.done.wait (!%p982_p11), %s684_s16, 256  }
 0x358   : > { %1371 = vsyncadd (!%p982_p11), %s684_s16, 4294967040  ;;  %s1932_s24 = sadd.s32 4294967294, %s1398_s10  }
 0x359   : > { %s692_s14 = sand.u32 1, %s1932_s24  }
 0x35a   : > { %s693_s22 = scalar_lea.sflag [#allocation15], %s692_s14 }
 0x35b   : > { %1373 = dma.done.wait (!%p982_p11), %s693_s22, 512  }
 0x35c   : > { %1375 = vsyncadd (!%p982_p11), %s693_s22, 4294966784  ;;  %s31_s10 = sadd.s32 1, %s1398_s10   ;;  %s1933_s27 = smov %s1382_s28 }
 0x35d   : > { %p28_p0 = scmp.ge.s32.totalorder %s31_s10, 4   ;;  %s1934_s28 = smov %s1386_s29 }
 0x35e   : > { %s1935_s29 = smov %s1662_s26  ;;  %s1936_s30 = smov %s1394_s9 }
 0x35f   : > { %s1937_s9 = smov %s1939_s2  ;;  %30 = sbr.rel (!%p28_p0) target bundleno = 16 (0x10), region = 147 }
 0x366   :  { %707 = vsyncpa [#allocation3], 1 }
 0x367   :  { %709 = vsyncpa [#allocation3 + $0x1], 1 }
 0x368   :  { %710 = vsyncpa [#allocation6], 1 }
 0x369   :  { %711 = vsyncpa [#allocation9], 1 }
 0x36a   :  { %712 = vsyncpa [#allocation12], 1 }
 0x36b   :  { %713 = vsyncpa [#allocation4], 1 }
 0x36c   :  { %715 = vsyncpa [#allocation4 + $0x1], 1 }
 0x36d   :  { %716 = vsyncpa [#allocation15], 1 }
 0x36e   :  { %718 = vsyncpa [#allocation15 + $0x1], 1 }

</bundles_post_ra>
